<compile_context>
chip_gen: v7x
topology: tpu7x:2x2x1
jax: 0.10.0
libtpu: 0.0.40
codegen_flags: <defaults>
</compile_context>

<pallas_src>
import jax
import jax.numpy as jnp
from jax.experimental import pallas as pl
from jax.experimental.pallas import tpu as pltpu


# ----------------------------- Pallas kernels --------------------------------

def conv_pool_relu_kernel(p_ref, w_ref, b_ref, o_ref):
    """Fused conv (im2col matmul) + 2x2 max-pool + bias + ReLU for a batch block.

    p_ref : (4, B, P, K) bf16  im2col patches; leading axis = position in pool window
    w_ref : (K, C)       bf16  flattened conv weight, K = kh*kw*cin
    b_ref : (1, C)       f32
    o_ref : (B, P, C)    bf16  pooled + ReLU'd activations (NHWC, HW flattened)
    """
    _, B, P, K = p_ref.shape
    C = w_ref.shape[1]
    # One big MXU push: (4*B*P, K) x (K, C), f32 accumulation.
    p = p_ref[...].reshape(4 * B * P, K)
    z = jnp.dot(p, w_ref[...], preferred_element_type=jnp.float32)
    z = z.reshape(4, B * P, C)
    # 2x2 max-pool = balanced max-tree over the leading "4" axis (VPU slot).
    pooled = jnp.maximum(jnp.maximum(z[0], z[1]), jnp.maximum(z[2], z[3]))
    # Bias is constant over the pool window, so bias-after-max == bias-before-max.
    act = jnp.maximum(pooled + b_ref[...], 0.0)
    o_ref[...] = act.reshape(B, P, C).astype(o_ref.dtype)


def conv_pool_relu_fc_kernel(p_ref, w_ref, b_ref, wfc_ref, bfc_ref, o_ref):
    """conv2 + 2x2 max-pool + ReLU + fully-connected head, fused in one kernel.

    p_ref   : (4, P, B, K) bf16  conv2 im2col patches (P = 16, K = 250); batch inner
    w_ref   : (K, C)       bf16  conv2 weight (C = 20)
    b_ref   : (1, C)       f32
    wfc_ref : (P, C, D)    bf16  fc weight, rows pre-permuted to (spatial, channel)
    bfc_ref : (1, D)       f32
    o_ref   : (B, D)       f32   logits
    """
    _, P, B, K = p_ref.shape
    C = w_ref.shape[1]
    D = o_ref.shape[1]
    p = p_ref[...].reshape(4 * P * B, K)
    z = jnp.dot(p, w_ref[...], preferred_element_type=jnp.float32)
    z = z.reshape(4, P * B, C)
    pooled = jnp.maximum(jnp.maximum(z[0], z[1]), jnp.maximum(z[2], z[3]))
    act = jnp.maximum(pooled + b_ref[...], 0.0).reshape(P, B, C)   # rows = (pos, sample)
    # Fully-connected head: sum over the P=16 pooled positions of small
    # (B, C) x (C, D) matmuls against the per-position fc-weight slab.  This keeps
    # the (P*C)=320 flatten implicit (no lane-changing reshape inside the kernel).
    acc = jnp.zeros((B, D), jnp.float32)
    for s in range(P):  # static unroll; leading-dim indexing only
        acc = acc + jnp.dot(act[s].astype(wfc_ref.dtype), wfc_ref[s],
                            preferred_element_type=jnp.float32)
    o_ref[...] = acc + bfc_ref[...]


# ------------------------------ JAX glue --------------------------------------

def _im2col_pooled(x_nhwc, kh, kw, *, batch_inner=False):
    """Conv patches grouped by 2x2 max-pool window.

    batch_inner=False : (4, N, PH*PW, kh*kw*C)
    batch_inner=True  : (4, PH*PW, N, kh*kw*C)
    The K axis is ordered (kh, kw, cin), matching HWIO weight flattening.
    """
    N, H, W, C = x_nhwc.shape
    OH, OW = H - kh + 1, W - kw + 1
    PH, PW = OH // 2, OW // 2
    cols = [x_nhwc[:, i:i + OH, j:j + OW, :] for i in range(kh) for j in range(kw)]
    patches = jnp.concatenate(cols, axis=-1)                   # (N, OH, OW, K)
    K = kh * kw * C
    p = patches.reshape(N, PH, 2, PW, 2, K)                    # (n, ph, dy, pw, dx, k)
    if batch_inner:
        p = p.transpose(2, 4, 1, 3, 0, 5).reshape(4, PH * PW, N, K)
    else:
        p = p.transpose(2, 4, 0, 1, 3, 5).reshape(4, N, PH * PW, K)
    return p, PH, PW


def conv_pool_relu(x_nhwc, w_hwio, b, kh, kw, block_b):
    """conv1 stage: returns pooled+ReLU'd NHWC activations (bf16)."""
    N = x_nhwc.shape[0]
    Cout = w_hwio.shape[-1]
    p, PH, PW = _im2col_pooled(x_nhwc, kh, kw)
    P, K = p.shape[2], p.shape[3]
    p = p.astype(jnp.bfloat16)
    wmat = w_hwio.reshape(K, Cout).astype(jnp.bfloat16)
    bmat = b.reshape(1, Cout).astype(jnp.float32)
    nb = N // block_b
    out = pl.pallas_call(
        conv_pool_relu_kernel,
        out_shape=jax.ShapeDtypeStruct((N, P, Cout), jnp.bfloat16),
        grid_spec=pltpu.PrefetchScalarGridSpec(
            num_scalar_prefetch=0,
            grid=(nb,),
            in_specs=[
                pl.BlockSpec((4, block_b, P, K), lambda n: (0, n, 0, 0)),
                pl.BlockSpec((K, Cout), lambda n: (0, 0)),
                pl.BlockSpec((1, Cout), lambda n: (0, 0)),
            ],
            out_specs=pl.BlockSpec((block_b, P, Cout), lambda n: (n, 0, 0)),
        ),
        compiler_params=pltpu.CompilerParams(dimension_semantics=("parallel",)),
    )(p, wmat, bmat)
    return out.reshape(N, PH, PW, Cout)                        # NHWC, bf16


def conv_pool_relu_fc(x_nhwc, w_hwio, b, wfc, bfc, kh, kw, block_b):
    """Fused conv2 + pool + ReLU + fc: returns (N, 10) logits (f32)."""
    N = x_nhwc.shape[0]
    Cout = w_hwio.shape[-1]
    Dout = wfc.shape[-1]
    p, PH, PW = _im2col_pooled(x_nhwc, kh, kw, batch_inner=True)
    P, K = p.shape[1], p.shape[3]                              # 16, 250
    p = p.astype(jnp.bfloat16)
    wmat = w_hwio.reshape(K, Cout).astype(jnp.bfloat16)
    bmat = b.reshape(1, Cout).astype(jnp.float32)
    # PyTorch flattens the pooled map in (C, H, W) order; the kernel walks it in
    # (HW, C) order, so permute fc-weight rows once: wfc[c*P + s] -> wfc3[s, c].
    wfc3 = wfc.reshape(Cout, P, Dout).transpose(1, 0, 2).astype(jnp.bfloat16)
    bfc2 = bfc.reshape(1, Dout).astype(jnp.float32)
    nb = N // block_b
    return pl.pallas_call(
        conv_pool_relu_fc_kernel,
        out_shape=jax.ShapeDtypeStruct((N, Dout), jnp.float32),
        grid_spec=pltpu.PrefetchScalarGridSpec(
            num_scalar_prefetch=0,
            grid=(nb,),
            in_specs=[
                pl.BlockSpec((4, P, block_b, K), lambda n: (0, 0, n, 0)),
                pl.BlockSpec((K, Cout), lambda n: (0, 0)),
                pl.BlockSpec((1, Cout), lambda n: (0, 0)),
                pl.BlockSpec((P, Cout, Dout), lambda n: (0, 0, 0)),
                pl.BlockSpec((1, Dout), lambda n: (0, 0)),
            ],
            out_specs=pl.BlockSpec((block_b, Dout), lambda n: (n, 0)),
        ),
        compiler_params=pltpu.CompilerParams(dimension_semantics=("parallel",)),
    )(p, wmat, bmat, wfc3, bfc2)


def net_forward(x_nchw, params, *, batch_block=8):
    """Forward pass of the PyTorch `Net` module. x is NCHW f32."""
    w1, b1, w2, b2, wfc, bfc = params
    N = x_nchw.shape[0]
    # Batch-block policy: whole batch in one grid step when small; otherwise
    # blocks of `batch_block` (multiple of 8 so all output blocks tile legally).
    if N <= batch_block:
        blk, n_pad = N, N
    else:
        blk = max(8, (batch_block // 8) * 8)
        n_pad = ((N + blk - 1) // blk) * blk
    x = jnp.transpose(x_nchw, (0, 2, 3, 1))                    # NCHW -> NHWC
    if n_pad != N:
        x = jnp.pad(x, ((0, n_pad - N), (0, 0), (0, 0), (0, 0)))
    h = conv_pool_relu(x, w1, b1, 5, 5, blk)                   # (n_pad, 12, 12, 10)
    out = conv_pool_relu_fc(h, w2, b2, wfc, bfc, 5, 5, blk)    # (n_pad, 10)
    return out[:N]


# Pure-JAX f32 reference (no Pallas) for correctness checking.
def net_reference(x_nchw, params):
    w1, b1, w2, b2, wfc, bfc = params

    def conv(x, w, b):
        y = jax.lax.conv_general_dilated(
            x, w, (1, 1), "VALID", dimension_numbers=("NHWC", "HWIO", "NHWC"))
        return y + b.reshape(1, 1, 1, -1)

    def pool(x):
        return jax.lax.reduce_window(
            x, -jnp.inf, jax.lax.max, (1, 2, 2, 1), (1, 2, 2, 1), "VALID")

    x = jnp.transpose(x_nchw, (0, 2, 3, 1))
    x = jax.nn.relu(pool(conv(x, w1, b1)))
    x = jax.nn.relu(pool(conv(x, w2, b2)))
    N = x.shape[0]
    x = jnp.transpose(x, (0, 3, 1, 2)).reshape(N, -1)          # CHW flatten
    return x @ wfc + bfc


def init_params(key):
    """Deterministic synthetic parameters; shapes match the PyTorch module."""
    ks = jax.random.split(key, 6)

    def uni(k, shape, fan_in):
        bound = 1.0 / jnp.sqrt(fan_in)
        return jax.random.uniform(k, shape, jnp.float32, -bound, bound)

    # conv1: PyTorch weight (10, 1, 5, 5) -> HWIO (5, 5, 1, 10)
    w1 = uni(ks[0], (5, 5, 1, 10), 1 * 5 * 5)
    b1 = uni(ks[1], (10,), 1 * 5 * 5)
    # conv2: (20, 10, 5, 5) -> HWIO (5, 5, 10, 20)
    w2 = uni(ks[2], (5, 5, 10, 20), 10 * 5 * 5)
    b2 = uni(ks[3], (20,), 10 * 5 * 5)
    # fc: PyTorch (10, 320) -> stored transposed (320, 10), rows in CHW order
    wfc = uni(ks[4], (320, 10), 320)
    bfc = uni(ks[5], (10,), 320)
    return (w1, b1, w2, b2, wfc, bfc)


if __name__ == "__main__":
    key = jax.random.PRNGKey(0)
    kx, kp = jax.random.split(key)
    # fc(320, 10) implies 28x28 single-channel inputs (MNIST).
    x = jax.random.normal(kx, (2, 1, 28, 28), jnp.float32)
    params = init_params(kp)

    out = jax.block_until_ready(net_forward(x, params))
    ref = jax.block_until_ready(net_reference(x, params))

    assert out.shape == (2, 10), out.shape
    # Tolerance reflects bf16 MXU operands with f32 accumulation vs. the f32
    # reference (measured max abs error ~5e-3 for this network/size).
    assert jnp.allclose(out, ref, atol=2e-2, rtol=2e-2), \
        f"max abs err {jnp.max(jnp.abs(out - ref))}"
    print("KERNEL_OK")
</pallas_src>

<mosaic_0001>
module attributes {stable_mosaic.version = 11 : i64} {
  func.func @conv_pool_relu_kernel(%arg0: i32, %arg1: memref<4x2x144x25xbf16, #tpu.memory_space<vmem>>, %arg2: memref<25x10xbf16, #tpu.memory_space<vmem>>, %arg3: memref<1x10xf32, #tpu.memory_space<vmem>>, %arg4: memref<2x144x10xbf16, #tpu.memory_space<vmem>>) attributes {dimension_semantics = [#tpu.dimension_semantics<parallel>], iteration_bounds = array<i64: 1>, scalar_prefetch = 0 : i64, scratch_operands = 0 : i64, tpu.core_type = #tpu.core_type<tc>, window_params = [{transform_indices = @transform_0, window_bounds = array<i64: 4, 2, 144, 25>}, {pipeline_mode = #tpu.pipeline_mode<synchronous>, transform_indices = @transform_1, window_bounds = array<i64: 25, 10>}, {pipeline_mode = #tpu.pipeline_mode<synchronous>, transform_indices = @transform_2, window_bounds = array<i64: 1, 10>}, {transform_indices = @transform_3, window_bounds = array<i64: 2, 144, 10>}]} {
    %c0 = arith.constant 0 : index
    %c0_0 = arith.constant 0 : index
    %c0_1 = arith.constant 0 : index
    %c0_2 = arith.constant 0 : index
    %0 = vector.load %arg1[%c0, %c0_0, %c0_1, %c0_2] : memref<4x2x144x25xbf16, #tpu.memory_space<vmem>>, vector<4x2x144x25xbf16>
    %1 = vector.shape_cast %0 : vector<4x2x144x25xbf16> to vector<1152x25xbf16>
    %c0_3 = arith.constant 0 : index
    %c0_4 = arith.constant 0 : index
    %2 = vector.load %arg2[%c0_3, %c0_4] : memref<25x10xbf16, #tpu.memory_space<vmem>>, vector<25x10xbf16>
    %cst = arith.constant dense<0.000000e+00> : vector<1152x10xf32>
    %3 = tpu.matmul %1, %2, %cst {dimension_numbers = #tpu.dot_dimension_numbers<[1], [0], [0], [1], [0, 0, 1, 1], [], []>} : vector<1152x25xbf16>, vector<25x10xbf16>, vector<1152x10xf32> -> vector<1152x10xf32>
    %4 = vector.shape_cast %3 : vector<1152x10xf32> to vector<4x288x10xf32>
    %5 = vector.extract_strided_slice %4 {offsets = [0, 0, 0], sizes = [1, 288, 10], strides = [1, 1, 1]} : vector<4x288x10xf32> to vector<1x288x10xf32>
    %6 = vector.shape_cast %5 : vector<1x288x10xf32> to vector<288x10xf32>
    %7 = vector.extract_strided_slice %4 {offsets = [1, 0, 0], sizes = [1, 288, 10], strides = [1, 1, 1]} : vector<4x288x10xf32> to vector<1x288x10xf32>
    %8 = vector.shape_cast %7 : vector<1x288x10xf32> to vector<288x10xf32>
    %9 = arith.maximumf %6, %8 : vector<288x10xf32>
    %10 = vector.extract_strided_slice %4 {offsets = [2, 0, 0], sizes = [1, 288, 10], strides = [1, 1, 1]} : vector<4x288x10xf32> to vector<1x288x10xf32>
    %11 = vector.shape_cast %10 : vector<1x288x10xf32> to vector<288x10xf32>
    %12 = vector.extract_strided_slice %4 {offsets = [3, 0, 0], sizes = [1, 288, 10], strides = [1, 1, 1]} : vector<4x288x10xf32> to vector<1x288x10xf32>
    %13 = vector.shape_cast %12 : vector<1x288x10xf32> to vector<288x10xf32>
    %14 = arith.maximumf %11, %13 : vector<288x10xf32>
    %15 = arith.maximumf %9, %14 : vector<288x10xf32>
    %c0_5 = arith.constant 0 : index
    %c0_6 = arith.constant 0 : index
    %16 = vector.load %arg3[%c0_5, %c0_6] : memref<1x10xf32, #tpu.memory_space<vmem>>, vector<1x10xf32>
    %17 = vector.broadcast %16 : vector<1x10xf32> to vector<288x10xf32>
    %18 = arith.addf %15, %17 : vector<288x10xf32>
    %cst_7 = arith.constant 0.000000e+00 : f32
    %19 = vector.broadcast %cst_7 : f32 to vector<288x10xf32>
    %20 = arith.maximumf %18, %19 : vector<288x10xf32>
    %21 = vector.shape_cast %20 : vector<288x10xf32> to vector<2x144x10xf32>
    %22 = arith.truncf %21 : vector<2x144x10xf32> to vector<2x144x10xbf16>
    %c0_8 = arith.constant 0 : index
    %c0_9 = arith.constant 0 : index
    %c0_10 = arith.constant 0 : index
    %23 = vector.load %arg4[%c0_8, %c0_9, %c0_10] : memref<2x144x10xbf16, #tpu.memory_space<vmem>>, vector<2x144x10xbf16>
    tpu.vector_store %arg4[%c0_8, %c0_9, %c0_10], %22 {strides = array<i32>} : memref<2x144x10xbf16, #tpu.memory_space<vmem>>, vector<2x144x10xbf16>,
    return
  }
  func.func @transform_0(%arg0: i32) -> (i32, i32, i32, i32) {
    %c0_i32 = arith.constant 0 : i32
    %c0_i32_0 = arith.constant 0 : i32
    %c0_i32_1 = arith.constant 0 : i32
    %c0_i32_2 = arith.constant 0 : i32
    return %c0_i32, %arg0, %c0_i32_0, %c0_i32_1 : i32, i32, i32, i32
  }
  func.func @transform_1(%arg0: i32) -> (i32, i32) {
    %c0_i32 = arith.constant 0 : i32
    %c0_i32_0 = arith.constant 0 : i32
    %c0_i32_1 = arith.constant 0 : i32
    return %c0_i32, %c0_i32_0 : i32, i32
  }
  func.func @transform_2(%arg0: i32) -> (i32, i32) {
    %c0_i32 = arith.constant 0 : i32
    %c0_i32_0 = arith.constant 0 : i32
    %c0_i32_1 = arith.constant 0 : i32
    return %c0_i32, %c0_i32_0 : i32, i32
  }
  func.func @transform_3(%arg0: i32) -> (i32, i32, i32) {
    %c0_i32 = arith.constant 0 : i32
    %c0_i32_0 = arith.constant 0 : i32
    %c0_i32_1 = arith.constant 0 : i32
    return %arg0, %c0_i32, %c0_i32_0 : i32, i32, i32
  }
}

</mosaic_0001>

<bundles_post_ra>
// kernel: tpu_custom_call.1
= control target key start
LH: loop header
LB: loop body
LE: loop exit
PB: predicated region body
PF: predicated region fallthrough
CT: control target
= control target key end

     0   :  { %vm751_vm0 = vcmask 1043456   ;;  %vm752_vm1 = vcmask 1044480   ;;  %vm534_vm2 = vcmask 203776   ;;  %v2259_v1 = vmov 65535   ;;  %s2975_s1 = inlined_call_operand.vmem [shape: bf16[25,10], index: 1, kind: input, shape index: {}]   ;;  %s2976_s0 = inlined_call_operand.vmem [shape: bf16[4,2,144,25], index: 0, kind: input, shape index: {}]   ;;  %s2977_s2 = inlined_call_operand.vmem [shape: f32[1,10], index: 2, kind: input, shape index: {}]   ;;  %s2978_s3 = inlined_call_operand.vmem [shape: bf16[2,144,10], index: 3, kind: output, shape index: {}]  }
   0x1   :  { %v2185_v0 = vld [vmem:[%s2975_s1] sm:$0xff]   ;;  %v753_v2 = vsel %vm751_vm0, 4294967295, %v2259_v1  ;;  %v2186_v3 = vld [vmem:[%s2975_s1 + $0x8] sm:$0x1f]   ;;  %v2191_v10 = vld [vmem:[%s2976_s0 + $0x10] sm:$0xff]   ;;  %vm1698_vm3 = vcmask 76800  }
   0x2   :  { %2032 = vmatprep.subr.bf16.mxu0 %v2185_v0  ;;  %2180 = vmatprep.subr.bf16.mxu1 %v2185_v0  ;;  %v754_v4 = vsel %vm752_vm1, %v753_v2, 0  ;;  %v2187_v5 = vld [vmem:[%s2976_s0] sm:$0xff]   ;;  %v2189_v8 = vld [vmem:[%s2976_s0 + $0x8] sm:$0xff]   ;;  %v2192_v11 = vld [vmem:[%s2976_s0 + $0x130] sm:$0xff]  }
   0x3   :  { %2033 = vmatpush3.bf16.msra.mxu0 %v2185_v0  ;;  %2182 = vmatpush3.bf16.msra.mxu1 %v2185_v0  ;;  %v756_v6 = vand.u32 %v2186_v3, %v754_v4  ;;  %v2188_v7 = vld [vmem:[%s2976_s0 + $0x120] sm:$0xff]   ;;  %v2190_v9 = vld [vmem:[%s2976_s0 + $0x128] sm:$0xff]   ;;  %v2193_v12 = vld [vmem:[%s2976_s0 + $0x18] sm:$0xff]  }
   0x4   :  { %2036 = vmatprep.mubr.msk.bf16.mxu0 %vm534_vm2, %v2187_v5  ;;  %2108 = vmatprep.mubr.msk.bf16.mxu1 %vm534_vm2, %v2188_v7  ;;  %v2194_v13 = vld [vmem:[%s2976_s0 + $0x138] sm:$0xff]   ;;  %v2195_v14 = vld [vmem:[%s2976_s0 + $0x20] sm:$0xff]   ;;  %v2197_v16 = vld [vmem:[%s2976_s0 + $0x28] sm:$0xff]  }
   0x5   :  { %2034 = vmatprep.subr.bf16.mxu0 %v756_v6  ;;  %2181 = vmatprep.subr.bf16.mxu1 %v756_v6  ;;  %v2196_v15 = vld [vmem:[%s2976_s0 + $0x140] sm:$0xff]   ;;  %v2198_v17 = vld [vmem:[%s2976_s0 + $0x148] sm:$0xff]   ;;  %v2199_v18 = vld [vmem:[%s2976_s0 + $0x30] sm:$0xff]  }
   0x6   :  { %v2200_v19 = vld [vmem:[%s2976_s0 + $0x150] sm:$0xff]   ;;  %v2201_v20 = vld [vmem:[%s2976_s0 + $0x38] sm:$0xff]   ;;  %v2203_v22 = vld [vmem:[%s2976_s0 + $0x40] sm:$0xff]  }
   0x7   :  { %2035 = vmatpush3.bf16.msra.mxu0 %v756_v6  ;;  %2183 = vmatpush3.bf16.msra.mxu1 %v756_v6  ;;  %v2202_v21 = vld [vmem:[%s2976_s0 + $0x158] sm:$0xff]   ;;  %v2204_v23 = vld [vmem:[%s2976_s0 + $0x160] sm:$0xff]   ;;  %v2205_v24 = vld [vmem:[%s2976_s0 + $0x48] sm:$0xff]  }
   0x8   :  { %v2206_v25 = vld [vmem:[%s2976_s0 + $0x168] sm:$0xff]   ;;  %v2207_v26 = vld [vmem:[%s2976_s0 + $0x50] sm:$0xff]   ;;  %v2209_v28 = vld [vmem:[%s2976_s0 + $0x58] sm:$0xff]  }
   0x9   :  { %v2208_v27 = vld [vmem:[%s2976_s0 + $0x170] sm:$0xff]   ;;  %v2210_v29 = vld [vmem:[%s2976_s0 + $0x178] sm:$0xff]   ;;  %v2211_v30 = vld [vmem:[%s2976_s0 + $0x60] sm:$0xff]  }
   0xa   :  { %2037 = vmatmul.mubr.msk.bf16.vlgmr.msra.gmra.mrb[0].mxu0 %vm534_vm2, %v2189_v8  ;;  %2109 = vmatmul.mubr.msk.bf16.vlgmr.msra.gmra.mrb[0].mxu1 %vm534_vm2, %v2190_v9  ;;  %v2212_v31 = vld [vmem:[%s2976_s0 + $0x180] sm:$0xff]   ;;  %v2213_v32 = vld [vmem:[%s2976_s0 + $0x68] sm:$0xff]   ;;  %v2215_v34 = vld [vmem:[%s2976_s0 + $0x70] sm:$0xff]  }
   0xb   :  { %2040 = vmatprep.mubr.msk.bf16.mxu0 %vm534_vm2, %v2191_v10  ;;  %2112 = vmatprep.mubr.msk.bf16.mxu1 %vm534_vm2, %v2192_v11  ;;  %v2214_v33 = vld [vmem:[%s2976_s0 + $0x188] sm:$0xff]   ;;  %v2216_v35 = vld [vmem:[%s2976_s0 + $0x190] sm:$0xff]   ;;  %v2217_v36 = vld [vmem:[%s2976_s0 + $0x78] sm:$0xff]  }
   0xc   :  { %v2218_v37 = vld [vmem:[%s2976_s0 + $0x198] sm:$0xff]   ;;  %v2219_v38 = vld [vmem:[%s2976_s0 + $0x80] sm:$0xff]   ;;  %v2221_v40 = vld [vmem:[%s2976_s0 + $0x88] sm:$0xff]  }
   0xd   :  { %v2220_v39 = vld [vmem:[%s2976_s0 + $0x1a0] sm:$0xff]   ;;  %v2222_v41 = vld [vmem:[%s2976_s0 + $0x1a8] sm:$0xff]   ;;  %v2223_v42 = vld [vmem:[%s2976_s0 + $0x90] sm:$0xff]  }
   0xe   :  { %v2224_v43 = vld [vmem:[%s2976_s0 + $0x1b0] sm:$0xff]   ;;  %v2225_v44 = vld [vmem:[%s2976_s0 + $0x98] sm:$0xff]   ;;  %v2227_v46 = vld [vmem:[%s2976_s0 + $0xa0] sm:$0xff]  }
   0xf   :  { %v2226_v45 = vld [vmem:[%s2976_s0 + $0x1b8] sm:$0xff]   ;;  %v2228_v47 = vld [vmem:[%s2976_s0 + $0x1c0] sm:$0xff]   ;;  %v2229_v48 = vld [vmem:[%s2976_s0 + $0xa8] sm:$0xff]  }
  0x10   :  { %v2230_v49 = vld [vmem:[%s2976_s0 + $0x1c8] sm:$0xff]   ;;  %v2231_v50 = vld [vmem:[%s2976_s0 + $0xb0] sm:$0xff]   ;;  %v2233_v52 = vld [vmem:[%s2976_s0 + $0xb8] sm:$0xff]  }
  0x11   :  { %v2232_v51 = vld [vmem:[%s2976_s0 + $0x1d0] sm:$0xff]   ;;  %v2234_v53 = vld [vmem:[%s2976_s0 + $0x1d8] sm:$0xff]   ;;  %v2235_v54 = vld [vmem:[%s2976_s0 + $0xc0] sm:$0xff]  }
  0x12   :  { %2041 = vmatmul.mubr.msk.bf16.gmra.mrb[4].mxu0 %vm534_vm2, %v2193_v12  ;;  %2113 = vmatmul.mubr.msk.bf16.gmra.mrb[4].mxu1 %vm534_vm2, %v2194_v13  ;;  %v2236_v55 = vld [vmem:[%s2976_s0 + $0x1e0] sm:$0xff]   ;;  %v2237_v56 = vld [vmem:[%s2976_s0 + $0xc8] sm:$0xff]   ;;  %v2239_v58 = vld [vmem:[%s2976_s0 + $0xd0] sm:$0xff]  }
  0x13   :  { %2044 = vmatprep.mubr.msk.bf16.mxu0 %vm534_vm2, %v2195_v14  ;;  %2116 = vmatprep.mubr.msk.bf16.mxu1 %vm534_vm2, %v2196_v15  ;;  %v2238_v57 = vld [vmem:[%s2976_s0 + $0x1e8] sm:$0xff]   ;;  %v2240_v59 = vld [vmem:[%s2976_s0 + $0x1f0] sm:$0xff]   ;;  %v2241_v60 = vld [vmem:[%s2976_s0 + $0xd8] sm:$0xff]  }
  0x14   :  { %v2242_v61 = vld [vmem:[%s2976_s0 + $0x1f8] sm:$0xff]   ;;  %v2243_v62 = vld [vmem:[%s2976_s0 + $0xe0] sm:$0xff]   ;;  %v2245_v0 = vld [vmem:[%s2976_s0 + $0xe8] sm:$0xff]  }
  0x15   :  { %v2244_v63 = vld [vmem:[%s2976_s0 + $0x200] sm:$0xff]   ;;  %v2246_v1 = vld [vmem:[%s2976_s0 + $0x208] sm:$0xff]   ;;  %v2247_v2 = vld [vmem:[%s2976_s0 + $0xf0] sm:$0xff]  }
  0x16   :  { %v2248_v3 = vld [vmem:[%s2976_s0 + $0x210] sm:$0xff]   ;;  %v2249_v4 = vld [vmem:[%s2976_s0 + $0xf8] sm:$0xff]   ;;  %v2251_v6 = vld [vmem:[%s2976_s0 + $0x100] sm:$0xff]  }
  0x17   :  { %v2250_v5 = vld [vmem:[%s2976_s0 + $0x218] sm:$0xff]   ;;  %v2252_v7 = vld [vmem:[%s2976_s0 + $0x220] sm:$0xff]   ;;  %v2253_v8 = vld [vmem:[%s2976_s0 + $0x108] sm:$0xff]  }
  0x18   :  { %v2254_v9 = vld [vmem:[%s2976_s0 + $0x228] sm:$0xff]   ;;  %v2255_v10 = vld [vmem:[%s2976_s0 + $0x110] sm:$0xff]   ;;  %v2257_v12 = vld [vmem:[%s2976_s0 + $0x118] sm:$0xff]  }
  0x19   :  { %v2256_v11 = vld [vmem:[%s2976_s0 + $0x230] sm:$0xff]   ;;  %v2258_v13 = vld [vmem:[%s2976_s0 + $0x238] sm:$0xff]  }
  0x1a   :  { %2045 = vmatmul.mubr.msk.bf16.gmra.mrb[8].mxu0 %vm534_vm2, %v2197_v16  ;;  %2117 = vmatmul.mubr.msk.bf16.gmra.mrb[8].mxu1 %vm534_vm2, %v2198_v17 }
  0x1b   :  { %2048 = vmatprep.mubr.msk.bf16.mxu0 %vm534_vm2, %v2199_v18  ;;  %2120 = vmatprep.mubr.msk.bf16.mxu1 %vm534_vm2, %v2200_v19 }
  0x22   :  { %2049 = vmatmul.mubr.msk.bf16.gmra.mrb[12].mxu0 %vm534_vm2, %v2201_v20  ;;  %2121 = vmatmul.mubr.msk.bf16.gmra.mrb[12].mxu1 %vm534_vm2, %v2202_v21 }
  0x23   :  { %2052 = vmatprep.mubr.msk.bf16.mxu0 %vm534_vm2, %v2203_v22  ;;  %2124 = vmatprep.mubr.msk.bf16.mxu1 %vm534_vm2, %v2204_v23 }
  0x2a   :  { %2053 = vmatmul.mubr.msk.bf16.gmra.mrb[16].mxu0 %vm534_vm2, %v2205_v24  ;;  %2125 = vmatmul.mubr.msk.bf16.gmra.mrb[16].mxu1 %vm534_vm2, %v2206_v25 }
  0x2b   :  { %2056 = vmatprep.mubr.msk.bf16.mxu0 %vm534_vm2, %v2207_v26  ;;  %2128 = vmatprep.mubr.msk.bf16.mxu1 %vm534_vm2, %v2208_v27 }
  0x32   :  { %2057 = vmatmul.mubr.msk.bf16.gmra.mrb[20].mxu0 %vm534_vm2, %v2209_v28  ;;  %2129 = vmatmul.mubr.msk.bf16.gmra.mrb[20].mxu1 %vm534_vm2, %v2210_v29 }
  0x33   :  { %2060 = vmatprep.mubr.msk.bf16.mxu0 %vm534_vm2, %v2211_v30  ;;  %2132 = vmatprep.mubr.msk.bf16.mxu1 %vm534_vm2, %v2212_v31 }
  0x3a   :  { %2061 = vmatmul.mubr.msk.bf16.gmra.mrb[24].mxu0 %vm534_vm2, %v2213_v32  ;;  %2133 = vmatmul.mubr.msk.bf16.gmra.mrb[24].mxu1 %vm534_vm2, %v2214_v33 }
  0x3b   :  { %2064 = vmatprep.mubr.msk.bf16.mxu0 %vm534_vm2, %v2215_v34  ;;  %2136 = vmatprep.mubr.msk.bf16.mxu1 %vm534_vm2, %v2216_v35 }
  0x42   :  { %2065 = vmatmul.mubr.msk.bf16.gmra.mrb[28].mxu0 %vm534_vm2, %v2217_v36  ;;  %2137 = vmatmul.mubr.msk.bf16.gmra.mrb[28].mxu1 %vm534_vm2, %v2218_v37 }
  0x43   :  { %2068 = vmatprep.mubr.msk.bf16.mxu0 %vm534_vm2, %v2219_v38  ;;  %2140 = vmatprep.mubr.msk.bf16.mxu1 %vm534_vm2, %v2220_v39 }
  0x4a   :  { %2069 = vmatmul.mubr.msk.bf16.gmra.mrb[32].mxu0 %vm534_vm2, %v2221_v40  ;;  %2141 = vmatmul.mubr.msk.bf16.gmra.mrb[32].mxu1 %vm534_vm2, %v2222_v41 }
  0x4b   :  { %2072 = vmatprep.mubr.msk.bf16.mxu0 %vm534_vm2, %v2223_v42  ;;  %2144 = vmatprep.mubr.msk.bf16.mxu1 %vm534_vm2, %v2224_v43 }
  0x52   :  { %2073 = vmatmul.mubr.msk.bf16.gmra.mrb[36].mxu0 %vm534_vm2, %v2225_v44  ;;  %2145 = vmatmul.mubr.msk.bf16.gmra.mrb[36].mxu1 %vm534_vm2, %v2226_v45 }
  0x53   :  { %2076 = vmatprep.mubr.msk.bf16.mxu0 %vm534_vm2, %v2227_v46  ;;  %2148 = vmatprep.mubr.msk.bf16.mxu1 %vm534_vm2, %v2228_v47 }
  0x5a   :  { %2077 = vmatmul.mubr.msk.bf16.gmra.mrb[40].mxu0 %vm534_vm2, %v2229_v48  ;;  %2149 = vmatmul.mubr.msk.bf16.gmra.mrb[40].mxu1 %vm534_vm2, %v2230_v49 }
  0x5b   :  { %2080 = vmatprep.mubr.msk.bf16.mxu0 %vm534_vm2, %v2231_v50  ;;  %2152 = vmatprep.mubr.msk.bf16.mxu1 %vm534_vm2, %v2232_v51 }
  0x62   :  { %2081 = vmatmul.mubr.msk.bf16.gmra.mrb[44].mxu0 %vm534_vm2, %v2233_v52  ;;  %2153 = vmatmul.mubr.msk.bf16.gmra.mrb[44].mxu1 %vm534_vm2, %v2234_v53 }
  0x63   :  { %2084 = vmatprep.mubr.msk.bf16.mxu0 %vm534_vm2, %v2235_v54  ;;  %2156 = vmatprep.mubr.msk.bf16.mxu1 %vm534_vm2, %v2236_v55 }
  0x6a   :  { %2085 = vmatmul.mubr.msk.bf16.gmra.mrb[48].mxu0 %vm534_vm2, %v2237_v56  ;;  %2157 = vmatmul.mubr.msk.bf16.gmra.mrb[48].mxu1 %vm534_vm2, %v2238_v57 }
  0x6b   :  { %2088 = vmatprep.mubr.msk.bf16.mxu0 %vm534_vm2, %v2239_v58  ;;  %2160 = vmatprep.mubr.msk.bf16.mxu1 %vm534_vm2, %v2240_v59 }
  0x72   :  { %2089 = vmatmul.mubr.msk.bf16.gmra.mrb[52].mxu0 %vm534_vm2, %v2241_v60  ;;  %2161 = vmatmul.mubr.msk.bf16.gmra.mrb[52].mxu1 %vm534_vm2, %v2242_v61 }
  0x73   :  { %2092 = vmatprep.mubr.msk.bf16.mxu0 %vm534_vm2, %v2243_v62  ;;  %2164 = vmatprep.mubr.msk.bf16.mxu1 %vm534_vm2, %v2244_v63 }
  0x7a   :  { %2093 = vmatmul.mubr.msk.bf16.gmra.mrb[56].mxu0 %vm534_vm2, %v2245_v0  ;;  %2165 = vmatmul.mubr.msk.bf16.gmra.mrb[56].mxu1 %vm534_vm2, %v2246_v1 }
  0x7b   :  { %2096 = vmatprep.mubr.msk.bf16.mxu0 %vm534_vm2, %v2247_v2  ;;  %2168 = vmatprep.mubr.msk.bf16.mxu1 %vm534_vm2, %v2248_v3 }
  0x82   :  { %2097 = vmatmul.mubr.msk.bf16.gmra.mrb[60].mxu0 %vm534_vm2, %v2249_v4  ;;  %2169 = vmatmul.mubr.msk.bf16.gmra.mrb[60].mxu1 %vm534_vm2, %v2250_v5 }
  0x83   :  { %2100 = vmatprep.mubr.msk.bf16.mxu0 %vm534_vm2, %v2251_v6  ;;  %2172 = vmatprep.mubr.msk.bf16.mxu1 %vm534_vm2, %v2252_v7 }
  0x8a   :  { %2101 = vmatmul.mubr.msk.bf16.gmra.mrb[64].mxu0 %vm534_vm2, %v2253_v8  ;;  %2173 = vmatmul.mubr.msk.bf16.gmra.mrb[64].mxu1 %vm534_vm2, %v2254_v9 }
  0x8b   :  { %2104 = vmatprep.mubr.msk.bf16.mxu0 %vm534_vm2, %v2255_v10  ;;  %2176 = vmatprep.mubr.msk.bf16.mxu1 %vm534_vm2, %v2256_v11 }
  0x92   :  { %2105 = vmatmul.mubr.msk.bf16.gmra.mrb[68].mxu0 %vm534_vm2, %v2257_v12  ;;  %2177 = vmatmul.mubr.msk.bf16.gmra.mrb[68].mxu1 %vm534_vm2, %v2258_v13 }
  0xdd   :  { %v2574_v14 = vpop.f32.mrb[0].mxu0  ;;  %v2576_v15 = vpop.f32.mrb[0].mxu1 }
  0xde   :  { %v2578_v16 = vpop.f32.mrb[1].mxu0  ;;  %v2580_v17 = vpop.f32.mrb[1].mxu1 }
  0xdf   :  { %v2582_v18 = vpop.f32.mrb[2].mxu0  ;;  %v2584_v19 = vpop.f32.mrb[2].mxu1 }
  0xe0   :  { %v2586_v20 = vpop.f32.mrb[3].mxu0  ;;  %v2588_v21 = vpop.f32.mrb[3].mxu1 }
  0xe5   :  { %v2590_v22 = vpop.f32.mrb[4].mxu0  ;;  %v2592_v23 = vpop.f32.mrb[4].mxu1 }
  0xe6   :  { %v2594_v24 = vpop.f32.mrb[5].mxu0  ;;  %v2596_v25 = vpop.f32.mrb[5].mxu1 }
  0xe7   :  { %v2598_v26 = vpop.f32.mrb[6].mxu0  ;;  %v2600_v27 = vpop.f32.mrb[6].mxu1 }
  0xe8   :  { %v2602_v28 = vpop.f32.mrb[7].mxu0  ;;  %v2604_v29 = vpop.f32.mrb[7].mxu1 }
  0xed   :  { %v2606_v30 = vpop.f32.mrb[8].mxu0  ;;  %v2608_v31 = vpop.f32.mrb[8].mxu1 }
  0xee   :  { %v2610_v32 = vpop.f32.mrb[9].mxu0  ;;  %v2612_v33 = vpop.f32.mrb[9].mxu1 }
  0xef   :  { %v2614_v34 = vpop.f32.mrb[10].mxu0  ;;  %v2616_v35 = vpop.f32.mrb[10].mxu1 }
  0xf0   :  { %v2618_v36 = vpop.f32.mrb[11].mxu0  ;;  %v2620_v37 = vpop.f32.mrb[11].mxu1 }
  0xf5   :  { %v2622_v38 = vpop.f32.mrb[12].mxu0  ;;  %v2624_v39 = vpop.f32.mrb[12].mxu1 }
  0xf6   :  { %v2626_v40 = vpop.f32.mrb[13].mxu0  ;;  %v2628_v41 = vpop.f32.mrb[13].mxu1 }
  0xf7   :  { %v2630_v42 = vpop.f32.mrb[14].mxu0  ;;  %v2632_v43 = vpop.f32.mrb[14].mxu1 }
  0xf8   :  { %v2634_v44 = vpop.f32.mrb[15].mxu0  ;;  %v2636_v45 = vpop.f32.mrb[15].mxu1 }
  0xfd   :  { %v2638_v46 = vpop.f32.mrb[16].mxu0  ;;  %v2640_v47 = vpop.f32.mrb[16].mxu1 }
  0xfe   :  { %v2642_v48 = vpop.f32.mrb[17].mxu0  ;;  %v2644_v49 = vpop.f32.mrb[17].mxu1 }
  0xff   :  { %v2646_v50 = vpop.f32.mrb[18].mxu0  ;;  %v2648_v51 = vpop.f32.mrb[18].mxu1 }
 0x100   :  { %v2650_v52 = vpop.f32.mrb[19].mxu0  ;;  %v2652_v53 = vpop.f32.mrb[19].mxu1 }
 0x105   :  { %v2654_v54 = vpop.f32.mrb[20].mxu0  ;;  %v2656_v55 = vpop.f32.mrb[20].mxu1 }
 0x106   :  { %v2658_v56 = vpop.f32.mrb[21].mxu0  ;;  %v2660_v57 = vpop.f32.mrb[21].mxu1 }
 0x107   :  { %v2662_v58 = vpop.f32.mrb[22].mxu0  ;;  %v2664_v59 = vpop.f32.mrb[22].mxu1 }
 0x108   :  { %v2666_v60 = vpop.f32.mrb[23].mxu0  ;;  %v2668_v61 = vpop.f32.mrb[23].mxu1 }
 0x109   :  { %2979 = vst [vmem:[#allocation2_spill] sm:$0xff] %v2668_v61 }
 0x10d   :  { %v2670_v62 = vpop.f32.mrb[24].mxu0  ;;  %v2672_v63 = vpop.f32.mrb[24].mxu1 }
 0x10e   :  { %2980 = vst [vmem:[#allocation3_spill] sm:$0xff] %v2670_v62  ;;  %2981 = vst [vmem:[#allocation4_spill] sm:$0xff] %v2672_v63  ;;  %v2674_v0 = vpop.f32.mrb[25].mxu0  ;;  %v2676_v1 = vpop.f32.mrb[25].mxu1 }
 0x10f   :  { %2982 = vst [vmem:[#allocation5_spill] sm:$0xff] %v2674_v0  ;;  %2983 = vst [vmem:[#allocation6_spill] sm:$0xff] %v2676_v1  ;;  %v2678_v2 = vpop.f32.mrb[26].mxu0  ;;  %v2680_v3 = vpop.f32.mrb[26].mxu1 }
 0x110   :  { %2984 = vst [vmem:[#allocation7_spill] sm:$0xff] %v2678_v2  ;;  %2985 = vst [vmem:[#allocation8_spill] sm:$0xff] %v2680_v3  ;;  %v2682_v4 = vpop.f32.mrb[27].mxu0  ;;  %v2684_v5 = vpop.f32.mrb[27].mxu1 }
 0x111   :  { %2986 = vst [vmem:[#allocation9_spill] sm:$0xff] %v2682_v4  ;;  %2987 = vst [vmem:[#allocation10_spill] sm:$0xff] %v2684_v5 }
 0x115   :  { %v2686_v6 = vpop.f32.mrb[28].mxu0  ;;  %v2688_v7 = vpop.f32.mrb[28].mxu1 }
 0x116   :  { %2988 = vst [vmem:[#allocation11_spill] sm:$0xff] %v2686_v6  ;;  %2989 = vst [vmem:[#allocation12_spill] sm:$0xff] %v2688_v7  ;;  %v2690_v8 = vpop.f32.mrb[29].mxu0  ;;  %v2692_v9 = vpop.f32.mrb[29].mxu1 }
 0x117   :  { %2990 = vst [vmem:[#allocation13_spill] sm:$0xff] %v2690_v8  ;;  %2991 = vst [vmem:[#allocation14_spill] sm:$0xff] %v2692_v9  ;;  %v2694_v10 = vpop.f32.mrb[30].mxu0  ;;  %v2696_v11 = vpop.f32.mrb[30].mxu1 }
 0x118   :  { %2992 = vst [vmem:[#allocation15_spill] sm:$0xff] %v2694_v10  ;;  %2993 = vst [vmem:[#allocation16_spill] sm:$0xff] %v2696_v11  ;;  %v2698_v12 = vpop.f32.mrb[31].mxu0  ;;  %v2700_v13 = vpop.f32.mrb[31].mxu1 }
 0x119   :  { %2994 = vst [vmem:[#allocation17_spill] sm:$0xff] %v2698_v12  ;;  %2995 = vst [vmem:[#allocation18_spill] sm:$0xff] %v2700_v13 }
 0x11d   :  { %v2702_v3 = vpop.f32.mrb[32].mxu0  ;;  %v2704_v4 = vpop.f32.mrb[32].mxu1 }
 0x11e   :  { %2996 = vst [vmem:[#allocation19_spill] sm:$0xff] %v2702_v3  ;;  %2997 = vst [vmem:[#allocation20_spill] sm:$0xff] %v2704_v4  ;;  %v2706_v5 = vpop.f32.mrb[33].mxu0  ;;  %v2708_v6 = vpop.f32.mrb[33].mxu1 }
 0x11f   :  { %2998 = vst [vmem:[#allocation21_spill] sm:$0xff] %v2706_v5  ;;  %2999 = vst [vmem:[#allocation22_spill] sm:$0xff] %v2708_v6  ;;  %v2710_v7 = vpop.f32.mrb[34].mxu0  ;;  %v2712_v8 = vpop.f32.mrb[34].mxu1  ;;  %v2723_v6 = vld [vmem:[%s2977_s2] ss:$0 sm:$0xff] }
 0x120   :  { %3000 = vst [vmem:[#allocation23_spill] sm:$0xff] %v2710_v7  ;;  %3001 = vst [vmem:[#allocation24_spill] sm:$0xff] %v2712_v8  ;;  %v2714_v9 = vpop.f32.mrb[35].mxu0  ;;  %v2716_v10 = vpop.f32.mrb[35].mxu1 }
 0x121   :  { %3002 = vst [vmem:[#allocation25_spill] sm:$0xff] %v2714_v9  ;;  %3003 = vst [vmem:[#allocation26_spill] sm:$0xff] %v2716_v10 }
 0x125   :  { %v2074_v11 = vpop.f32.mrb[36].mxu0  ;;  %v2146_v12 = vpop.f32.mrb[36].mxu1 }
 0x126   :  { %v1369_v13 = vmax.f32 %v2574_v14, %v2074_v11  ;;  %v1405_v3 = vmax.f32 %v2576_v15, %v2146_v12  ;;  %v936_v2 = vpop.f32.mrb[37].mxu0  ;;  %v1224_v4 = vpop.f32.mrb[37].mxu1 }
 0x127   :  { %v1367_v7 = vmax.f32 %v2578_v16, %v936_v2  ;;  %v1403_v8 = vmax.f32 %v2580_v17, %v1224_v4  ;;  %v2075_v9 = vpop.f32.mrb[38].mxu0  ;;  %v2147_v5 = vpop.f32.mrb[38].mxu1 }
 0x128   :  { %v1441_v10 = vmax.f32 %v1369_v13, %v1405_v3  ;;  %v1370_v1 = vmax.f32 %v2582_v18, %v2075_v9  ;;  %v1406_v14 = vmax.f32 %v2584_v19, %v2147_v5  ;;  %v939_v11 = vpop.f32.mrb[39].mxu0  ;;  %v1227_v15 = vpop.f32.mrb[39].mxu1 }
 0x129   :  { %v1439_v12 = vmax.f32 %v1367_v7, %v1403_v8  ;;  %v1368_v0 = vmax.f32 %v2586_v20, %v939_v11  ;;  %v1404_v63 = vmax.f32 %v2588_v21, %v1227_v15 }
 0x12a   :  { %v1484_v62 = vadd.f32 %v2723_v6, %v1441_v10  ;;  %v1442_v61 = vmax.f32 %v1370_v1, %v1406_v14 }
 0x12b   :  { %v1482_v16 = vadd.f32 %v2723_v6, %v1439_v12  ;;  %v1440_v17 = vmax.f32 %v1368_v0, %v1404_v63 }
 0x12c   :  { %v1520_v2 = vmax.f32 %v1484_v62, 0.0  ;;  %v1485_v3 = vadd.f32 %v2723_v6, %v1442_v61 }
 0x12d   :  { %v1518_v18 = vmax.f32 %v1482_v16, 0.0  ;;  %v1483_v19 = vadd.f32 %v2723_v6, %v1440_v17  ;;  %v2078_v4 = vpop.f32.mrb[40].mxu0  ;;  %v2150_v5 = vpop.f32.mrb[40].mxu1 }
 0x12e   :  { %v1924_v7 = vpack.c.bf16 %v1520_v2, %v1520_v2  ;;  %v1521_v8 = vmax.f32 %v1485_v3, 0.0  ;;  %v1373_v20 = vmax.f32 %v2590_v22, %v2078_v4  ;;  %v1409_v21 = vmax.f32 %v2592_v23, %v2150_v5  ;;  %v952_v9 = vpop.f32.mrb[41].mxu0  ;;  %v1240_v1 = vpop.f32.mrb[41].mxu1 }
 0x12f   :  { %v1922_v10 = vpack.c.bf16 %v1518_v18, %v1518_v18  ;;  %v1519_v13 = vmax.f32 %v1483_v19, 0.0  ;;  %v1371_v62 = vmax.f32 %v2594_v24, %v952_v9  ;;  %v1407_v61 = vmax.f32 %v2596_v25, %v1240_v1  ;;  %v2079_v63 = vpop.f32.mrb[42].mxu0  ;;  %v2151_v0 = vpop.f32.mrb[42].mxu1 }
 0x130   :  { %1701 = vst.msk [vmem:[%s2978_s3 + $0x8] sm:$0xf] %vm1698_vm3, %v1924_v7  ;;  %v1925_v14 = vpack.c.bf16 %v1521_v8, %v1521_v8  ;;  %v1445_v11 = vmax.f32 %v1373_v20, %v1409_v21  ;;  %v1374_v22 = vmax.f32 %v2598_v26, %v2079_v63  ;;  %v1410_v23 = vmax.f32 %v2600_v27, %v2151_v0  ;;  %v955_v15 = vpop.f32.mrb[43].mxu0  ;;  %v1243_v12 = vpop.f32.mrb[43].mxu1 }
 0x131   :  { %1699 = vst.msk [vmem:[%s2978_s3] sm:$0xf] %vm1698_vm3, %v1922_v10  ;;  %v1923_v24 = vpack.c.bf16 %v1519_v13, %v1519_v13  ;;  %v1443_v25 = vmax.f32 %v1371_v62, %v1407_v61  ;;  %v1372_v16 = vmax.f32 %v2602_v28, %v955_v15  ;;  %v1408_v17 = vmax.f32 %v2604_v29, %v1243_v12 }
 0x132   :  { %1702 = vst.msk [vmem:[%s2978_s3 + $0xc] sm:$0xf] %vm1698_vm3, %v1925_v14  ;;  %v1488_v26 = vadd.f32 %v2723_v6, %v1445_v11  ;;  %v1446_v27 = vmax.f32 %v1374_v22, %v1410_v23 }
 0x133   :  { %1700 = vst.msk [vmem:[%s2978_s3 + $0x4] sm:$0xf] %vm1698_vm3, %v1923_v24  ;;  %v1486_v2 = vadd.f32 %v2723_v6, %v1443_v25  ;;  %v1444_v3 = vmax.f32 %v1372_v16, %v1408_v17 }
 0x134   :  { %v1524_v18 = vmax.f32 %v1488_v26, 0.0  ;;  %v1489_v28 = vadd.f32 %v2723_v6, %v1446_v27 }
 0x135   :  { %v1522_v29 = vmax.f32 %v1486_v2, 0.0  ;;  %v1487_v19 = vadd.f32 %v2723_v6, %v1444_v3  ;;  %v2082_v4 = vpop.f32.mrb[44].mxu0  ;;  %v2154_v5 = vpop.f32.mrb[44].mxu1 }
 0x136   :  { %v1928_v7 = vpack.c.bf16 %v1524_v18, %v1524_v18  ;;  %v1525_v8 = vmax.f32 %v1489_v28, 0.0  ;;  %v1377_v20 = vmax.f32 %v2606_v30, %v2082_v4  ;;  %v1413_v21 = vmax.f32 %v2608_v31, %v2154_v5  ;;  %v968_v9 = vpop.f32.mrb[45].mxu0  ;;  %v1256_v1 = vpop.f32.mrb[45].mxu1 }
 0x137   :  { %v1926_v10 = vpack.c.bf16 %v1522_v29, %v1522_v29  ;;  %v1523_v13 = vmax.f32 %v1487_v19, 0.0  ;;  %v1375_v62 = vmax.f32 %v2610_v32, %v968_v9  ;;  %v1411_v61 = vmax.f32 %v2612_v33, %v1256_v1  ;;  %v2083_v63 = vpop.f32.mrb[46].mxu0  ;;  %v2155_v0 = vpop.f32.mrb[46].mxu1 }
 0x138   :  { %1705 = vst.msk [vmem:[%s2978_s3 + $0x18] sm:$0xf] %vm1698_vm3, %v1928_v7  ;;  %v1929_v14 = vpack.c.bf16 %v1525_v8, %v1525_v8  ;;  %v1449_v11 = vmax.f32 %v1377_v20, %v1413_v21  ;;  %v1378_v30 = vmax.f32 %v2614_v34, %v2083_v63  ;;  %v1414_v31 = vmax.f32 %v2616_v35, %v2155_v0  ;;  %v971_v22 = vpop.f32.mrb[47].mxu0  ;;  %v1259_v23 = vpop.f32.mrb[47].mxu1 }
 0x139   :  { %1703 = vst.msk [vmem:[%s2978_s3 + $0x10] sm:$0xf] %vm1698_vm3, %v1926_v10  ;;  %v1927_v32 = vpack.c.bf16 %v1523_v13, %v1523_v13  ;;  %v1447_v33 = vmax.f32 %v1375_v62, %v1411_v61  ;;  %v1376_v15 = vmax.f32 %v2618_v36, %v971_v22  ;;  %v1412_v12 = vmax.f32 %v2620_v37, %v1259_v23 }
 0x13a   :  { %1706 = vst.msk [vmem:[%s2978_s3 + $0x1c] sm:$0xf] %vm1698_vm3, %v1929_v14  ;;  %v1492_v34 = vadd.f32 %v2723_v6, %v1449_v11  ;;  %v1450_v35 = vmax.f32 %v1378_v30, %v1414_v31 }
 0x13b   :  { %1704 = vst.msk [vmem:[%s2978_s3 + $0x14] sm:$0xf] %vm1698_vm3, %v1927_v32  ;;  %v1490_v24 = vadd.f32 %v2723_v6, %v1447_v33  ;;  %v1448_v25 = vmax.f32 %v1376_v15, %v1412_v12 }
 0x13c   :  { %v1528_v16 = vmax.f32 %v1492_v34, 0.0  ;;  %v1493_v36 = vadd.f32 %v2723_v6, %v1450_v35 }
 0x13d   :  { %v1526_v37 = vmax.f32 %v1490_v24, 0.0  ;;  %v1491_v17 = vadd.f32 %v2723_v6, %v1448_v25  ;;  %v2086_v26 = vpop.f32.mrb[48].mxu0  ;;  %v2158_v27 = vpop.f32.mrb[48].mxu1 }
 0x13e   :  { %v1932_v2 = vpack.c.bf16 %v1528_v16, %v1528_v16  ;;  %v1529_v3 = vmax.f32 %v1493_v36, 0.0  ;;  %v1381_v18 = vmax.f32 %v2622_v38, %v2086_v26  ;;  %v1417_v28 = vmax.f32 %v2624_v39, %v2158_v27  ;;  %v984_v29 = vpop.f32.mrb[49].mxu0  ;;  %v1272_v19 = vpop.f32.mrb[49].mxu1 }
 0x13f   :  { %v1930_v4 = vpack.c.bf16 %v1526_v37, %v1526_v37  ;;  %v1527_v5 = vmax.f32 %v1491_v17, 0.0  ;;  %v1379_v7 = vmax.f32 %v2626_v40, %v984_v29  ;;  %v1415_v8 = vmax.f32 %v2628_v41, %v1272_v19  ;;  %v2087_v20 = vpop.f32.mrb[50].mxu0  ;;  %v2159_v21 = vpop.f32.mrb[50].mxu1 }
 0x140   :  { %1709 = vst.msk [vmem:[%s2978_s3 + $0x28] sm:$0xf] %vm1698_vm3, %v1932_v2  ;;  %v1933_v9 = vpack.c.bf16 %v1529_v3, %v1529_v3  ;;  %v1453_v1 = vmax.f32 %v1381_v18, %v1417_v28  ;;  %v1382_v38 = vmax.f32 %v2630_v42, %v2087_v20  ;;  %v1418_v39 = vmax.f32 %v2632_v43, %v2159_v21  ;;  %v987_v10 = vpop.f32.mrb[51].mxu0  ;;  %v1275_v13 = vpop.f32.mrb[51].mxu1 }
 0x141   :  { %1707 = vst.msk [vmem:[%s2978_s3 + $0x20] sm:$0xf] %vm1698_vm3, %v1930_v4  ;;  %v1931_v40 = vpack.c.bf16 %v1527_v5, %v1527_v5  ;;  %v1451_v41 = vmax.f32 %v1379_v7, %v1415_v8  ;;  %v1380_v62 = vmax.f32 %v2634_v44, %v987_v10  ;;  %v1416_v61 = vmax.f32 %v2636_v45, %v1275_v13 }
 0x142   :  { %1710 = vst.msk [vmem:[%s2978_s3 + $0x2c] sm:$0xf] %vm1698_vm3, %v1933_v9  ;;  %v1496_v42 = vadd.f32 %v2723_v6, %v1453_v1  ;;  %v1454_v43 = vmax.f32 %v1382_v38, %v1418_v39 }
 0x143   :  { %1708 = vst.msk [vmem:[%s2978_s3 + $0x24] sm:$0xf] %vm1698_vm3, %v1931_v40  ;;  %v1494_v63 = vadd.f32 %v2723_v6, %v1451_v41  ;;  %v1452_v0 = vmax.f32 %v1380_v62, %v1416_v61 }
 0x144   :  { %v1532_v14 = vmax.f32 %v1496_v42, 0.0  ;;  %v1497_v44 = vadd.f32 %v2723_v6, %v1454_v43 }
 0x145   :  { %v1530_v45 = vmax.f32 %v1494_v63, 0.0  ;;  %v1495_v11 = vadd.f32 %v2723_v6, %v1452_v0  ;;  %v2090_v30 = vpop.f32.mrb[52].mxu0  ;;  %v2162_v31 = vpop.f32.mrb[52].mxu1  ;;  %v3004_v0 = vld [vmem:[#allocation2_spill] sm:$0xff] }
 0x146   :  { %v1936_v22 = vpack.c.bf16 %v1532_v14, %v1532_v14  ;;  %v1533_v23 = vmax.f32 %v1497_v44, 0.0  ;;  %v1385_v32 = vmax.f32 %v2638_v46, %v2090_v30  ;;  %v1421_v33 = vmax.f32 %v2640_v47, %v2162_v31  ;;  %v1000_v15 = vpop.f32.mrb[53].mxu0  ;;  %v1288_v12 = vpop.f32.mrb[53].mxu1 }
 0x147   :  { %v1934_v34 = vpack.c.bf16 %v1530_v45, %v1530_v45  ;;  %v1531_v35 = vmax.f32 %v1495_v11, 0.0  ;;  %v1383_v24 = vmax.f32 %v2642_v48, %v1000_v15  ;;  %v1419_v25 = vmax.f32 %v2644_v49, %v1288_v12  ;;  %v2091_v16 = vpop.f32.mrb[54].mxu0  ;;  %v2163_v36 = vpop.f32.mrb[54].mxu1  ;;  %v3005_v15 = vld [vmem:[#allocation3_spill] sm:$0xff] }
 0x148   :  { %1713 = vst.msk [vmem:[%s2978_s3 + $0x38] sm:$0xf] %vm1698_vm3, %v1936_v22  ;;  %v1937_v37 = vpack.c.bf16 %v1533_v23, %v1533_v23  ;;  %v1457_v17 = vmax.f32 %v1385_v32, %v1421_v33  ;;  %v1386_v46 = vmax.f32 %v2646_v50, %v2091_v16  ;;  %v1422_v47 = vmax.f32 %v2648_v51, %v2163_v36  ;;  %v1003_v26 = vpop.f32.mrb[55].mxu0  ;;  %v1291_v27 = vpop.f32.mrb[55].mxu1 }
 0x149   :  { %1711 = vst.msk [vmem:[%s2978_s3 + $0x30] sm:$0xf] %vm1698_vm3, %v1934_v34  ;;  %v1935_v48 = vpack.c.bf16 %v1531_v35, %v1531_v35  ;;  %v1455_v49 = vmax.f32 %v1383_v24, %v1419_v25  ;;  %v1384_v2 = vmax.f32 %v2650_v52, %v1003_v26  ;;  %v1420_v3 = vmax.f32 %v2652_v53, %v1291_v27  ;;  %v3006_v34 = vld [vmem:[#allocation4_spill] sm:$0xff] }
 0x14a   :  { %1714 = vst.msk [vmem:[%s2978_s3 + $0x3c] sm:$0xf] %vm1698_vm3, %v1937_v37  ;;  %v1500_v50 = vadd.f32 %v2723_v6, %v1457_v17  ;;  %v1458_v51 = vmax.f32 %v1386_v46, %v1422_v47  ;;  %v3007_v37 = vld [vmem:[#allocation5_spill] sm:$0xff]  ;;  %v3008_v46 = vld [vmem:[#allocation6_spill] sm:$0xff] }
 0x14b   :  { %1712 = vst.msk [vmem:[%s2978_s3 + $0x34] sm:$0xf] %vm1698_vm3, %v1935_v48  ;;  %v1498_v18 = vadd.f32 %v2723_v6, %v1455_v49  ;;  %v1456_v28 = vmax.f32 %v1384_v2, %v1420_v3  ;;  %v3009_v2 = vld [vmem:[#allocation7_spill] sm:$0xff] }
 0x14c   :  { %v1536_v29 = vmax.f32 %v1500_v50, 0.0  ;;  %v1501_v52 = vadd.f32 %v2723_v6, %v1458_v51  ;;  %v3010_v50 = vld [vmem:[#allocation8_spill] sm:$0xff] }
 0x14d   :  { %v1534_v53 = vmax.f32 %v1498_v18, 0.0  ;;  %v1499_v19 = vadd.f32 %v2723_v6, %v1456_v28  ;;  %v2094_v4 = vpop.f32.mrb[56].mxu0  ;;  %v2166_v5 = vpop.f32.mrb[56].mxu1 }
 0x14e   :  { %v1940_v7 = vpack.c.bf16 %v1536_v29, %v1536_v29  ;;  %v1537_v8 = vmax.f32 %v1501_v52, 0.0  ;;  %v1389_v20 = vmax.f32 %v2654_v54, %v2094_v4  ;;  %v1425_v21 = vmax.f32 %v2656_v55, %v2166_v5  ;;  %v1016_v9 = vpop.f32.mrb[57].mxu0  ;;  %v1304_v1 = vpop.f32.mrb[57].mxu1  ;;  %v3012_v4 = vld [vmem:[#allocation10_spill] sm:$0xff] }
 0x14f   :  { %v1938_v38 = vpack.c.bf16 %v1534_v53, %v1534_v53  ;;  %v1535_v39 = vmax.f32 %v1499_v19, 0.0  ;;  %v1387_v10 = vmax.f32 %v2658_v56, %v1016_v9  ;;  %v1423_v13 = vmax.f32 %v2660_v57, %v1304_v1  ;;  %v2095_v40 = vpop.f32.mrb[58].mxu0  ;;  %v2167_v41 = vpop.f32.mrb[58].mxu1  ;;  %v3011_v53 = vld [vmem:[#allocation9_spill] sm:$0xff] }
 0x150   :  { %1717 = vst.msk [vmem:[%s2978_s3 + $0x48] sm:$0xf] %vm1698_vm3, %v1940_v7  ;;  %v1941_v62 = vpack.c.bf16 %v1537_v8, %v1537_v8  ;;  %v1461_v61 = vmax.f32 %v1389_v20, %v1425_v21  ;;  %v1390_v54 = vmax.f32 %v2662_v58, %v2095_v40  ;;  %v1426_v55 = vmax.f32 %v2664_v59, %v2167_v41  ;;  %v1019_v42 = vpop.f32.mrb[59].mxu0  ;;  %v1307_v43 = vpop.f32.mrb[59].mxu1 }
 0x151   :  { %1715 = vst.msk [vmem:[%s2978_s3 + $0x40] sm:$0xf] %vm1698_vm3, %v1938_v38  ;;  %v1939_v56 = vpack.c.bf16 %v1535_v39, %v1535_v39  ;;  %v1459_v57 = vmax.f32 %v1387_v10, %v1423_v13  ;;  %v1388_v63 = vmax.f32 %v2666_v60, %v1019_v42  ;;  %v1424_v14 = vmax.f32 %v3004_v0, %v1307_v43 }
 0x152   :  { %1718 = vst.msk [vmem:[%s2978_s3 + $0x4c] sm:$0xf] %vm1698_vm3, %v1941_v62  ;;  %v1504_v58 = vadd.f32 %v2723_v6, %v1461_v61  ;;  %v1462_v59 = vmax.f32 %v1390_v54, %v1426_v55  ;;  %v3013_v62 = vld [vmem:[#allocation11_spill] sm:$0xff]  ;;  %v3014_v54 = vld [vmem:[#allocation12_spill] sm:$0xff] }
 0x153   :  { %1716 = vst.msk [vmem:[%s2978_s3 + $0x44] sm:$0xf] %vm1698_vm3, %v1939_v56  ;;  %v1502_v44 = vadd.f32 %v2723_v6, %v1459_v57  ;;  %v1460_v45 = vmax.f32 %v1388_v63, %v1424_v14  ;;  %v3015_v63 = vld [vmem:[#allocation13_spill] sm:$0xff]  ;;  %v3016_v14 = vld [vmem:[#allocation14_spill] sm:$0xff] }
 0x154   :  { %v1540_v11 = vmax.f32 %v1504_v58, 0.0  ;;  %v1505_v60 = vadd.f32 %v2723_v6, %v1462_v59 }
 0x155   :  { %v1538_v30 = vmax.f32 %v1502_v44, 0.0  ;;  %v1503_v31 = vadd.f32 %v2723_v6, %v1460_v45  ;;  %v2098_v22 = vpop.f32.mrb[60].mxu0  ;;  %v2170_v23 = vpop.f32.mrb[60].mxu1 }
 0x156   :  { %v1944_v32 = vpack.c.bf16 %v1540_v11, %v1540_v11  ;;  %v1541_v33 = vmax.f32 %v1505_v60, 0.0  ;;  %v1393_v12 = vmax.f32 %v3005_v15, %v2098_v22  ;;  %v1429_v35 = vmax.f32 %v3006_v34, %v2170_v23  ;;  %v1032_v24 = vpop.f32.mrb[61].mxu0  ;;  %v1320_v25 = vpop.f32.mrb[61].mxu1  ;;  %v3017_v60 = vld [vmem:[#allocation15_spill] sm:$0xff] }
 0x157   :  { %v1942_v16 = vpack.c.bf16 %v1538_v30, %v1538_v30  ;;  %v1539_v36 = vmax.f32 %v1503_v31, 0.0  ;;  %v1391_v17 = vmax.f32 %v3007_v37, %v1032_v24  ;;  %v1427_v47 = vmax.f32 %v3008_v46, %v1320_v25  ;;  %v2099_v26 = vpop.f32.mrb[62].mxu0  ;;  %v2171_v27 = vpop.f32.mrb[62].mxu1  ;;  %v3018_v31 = vld [vmem:[#allocation16_spill] sm:$0xff] }
 0x158   :  { %1721 = vst.msk [vmem:[%s2978_s3 + $0x58] sm:$0xf] %vm1698_vm3, %v1944_v32  ;;  %v1945_v48 = vpack.c.bf16 %v1541_v33, %v1541_v33  ;;  %v1465_v49 = vmax.f32 %v1393_v12, %v1429_v35  ;;  %v1394_v3 = vmax.f32 %v3009_v2, %v2099_v26  ;;  %v1430_v51 = vmax.f32 %v3010_v50, %v2171_v27  ;;  %v1035_v18 = vpop.f32.mrb[63].mxu0  ;;  %v1323_v28 = vpop.f32.mrb[63].mxu1  ;;  %v3019_v12 = vld [vmem:[#allocation17_spill] sm:$0xff]  ;;  %v3020_v35 = vld [vmem:[#allocation18_spill] sm:$0xff] }
 0x159   :  { %1719 = vst.msk [vmem:[%s2978_s3 + $0x50] sm:$0xf] %vm1698_vm3, %v1942_v16  ;;  %v1943_v29 = vpack.c.bf16 %v1539_v36, %v1539_v36  ;;  %v1463_v52 = vmax.f32 %v1391_v17, %v1427_v47  ;;  %v1392_v19 = vmax.f32 %v3011_v53, %v1035_v18  ;;  %v1428_v5 = vmax.f32 %v3012_v4, %v1323_v28 }
 0x15a   :  { %1722 = vst.msk [vmem:[%s2978_s3 + $0x5c] sm:$0xf] %vm1698_vm3, %v1945_v48  ;;  %v1508_v7 = vadd.f32 %v2723_v6, %v1465_v49  ;;  %v1466_v8 = vmax.f32 %v1394_v3, %v1430_v51  ;;  %v3021_v3 = vld [vmem:[#allocation19_spill] sm:$0xff]  ;;  %v3022_v51 = vld [vmem:[#allocation20_spill] sm:$0xff] }
 0x15b   :  { %1720 = vst.msk [vmem:[%s2978_s3 + $0x54] sm:$0xf] %vm1698_vm3, %v1943_v29  ;;  %v1506_v20 = vadd.f32 %v2723_v6, %v1463_v52  ;;  %v1464_v21 = vmax.f32 %v1392_v19, %v1428_v5  ;;  %v3023_v19 = vld [vmem:[#allocation21_spill] sm:$0xff]  ;;  %v3024_v5 = vld [vmem:[#allocation22_spill] sm:$0xff] }
 0x15c   :  { %v1544_v9 = vmax.f32 %v1508_v7, 0.0  ;;  %v1509_v1 = vadd.f32 %v2723_v6, %v1466_v8 }
 0x15d   :  { %v1542_v38 = vmax.f32 %v1506_v20, 0.0  ;;  %v1507_v39 = vadd.f32 %v2723_v6, %v1464_v21  ;;  %v2102_v10 = vpop.f32.mrb[64].mxu0  ;;  %v2174_v13 = vpop.f32.mrb[64].mxu1 }
 0x15e   :  { %v1948_v40 = vpack.c.bf16 %v1544_v9, %v1544_v9  ;;  %v1545_v41 = vmax.f32 %v1509_v1, 0.0  ;;  %v1397_v61 = vmax.f32 %v3013_v62, %v2102_v10  ;;  %v1433_v55 = vmax.f32 %v3014_v54, %v2174_v13  ;;  %v1048_v42 = vpop.f32.mrb[65].mxu0  ;;  %v1336_v43 = vpop.f32.mrb[65].mxu1  ;;  %v3025_v1 = vld [vmem:[#allocation23_spill] sm:$0xff] }
 0x15f   :  { %v1946_v56 = vpack.c.bf16 %v1542_v38, %v1542_v38  ;;  %v1543_v57 = vmax.f32 %v1507_v39, 0.0  ;;  %v1395_v0 = vmax.f32 %v3015_v63, %v1048_v42  ;;  %v1431_v58 = vmax.f32 %v3016_v14, %v1336_v43  ;;  %v2103_v59 = vpop.f32.mrb[66].mxu0  ;;  %v2175_v44 = vpop.f32.mrb[66].mxu1  ;;  %v3026_v39 = vld [vmem:[#allocation24_spill] sm:$0xff] }
 0x160   :  { %1725 = vst.msk [vmem:[%s2978_s3 + $0x68] sm:$0xf] %vm1698_vm3, %v1948_v40  ;;  %v1949_v45 = vpack.c.bf16 %v1545_v41, %v1545_v41  ;;  %v1469_v11 = vmax.f32 %v1397_v61, %v1433_v55  ;;  %v1398_v30 = vmax.f32 %v3017_v60, %v2103_v59  ;;  %v1434_v22 = vmax.f32 %v3018_v31, %v2175_v44  ;;  %v1051_v23 = vpop.f32.mrb[67].mxu0  ;;  %v1339_v32 = vpop.f32.mrb[67].mxu1  ;;  %v3027_v61 = vld [vmem:[#allocation25_spill] sm:$0xff]  ;;  %v3028_v55 = vld [vmem:[#allocation26_spill] sm:$0xff] }
 0x161   :  { %1723 = vst.msk [vmem:[%s2978_s3 + $0x60] sm:$0xf] %vm1698_vm3, %v1946_v56  ;;  %v1947_v33 = vpack.c.bf16 %v1543_v57, %v1543_v57  ;;  %v1467_v15 = vmax.f32 %v1395_v0, %v1431_v58  ;;  %v1396_v34 = vmax.f32 %v3019_v12, %v1051_v23  ;;  %v1432_v24 = vmax.f32 %v3020_v35, %v1339_v32 }
 0x162   :  { %1726 = vst.msk [vmem:[%s2978_s3 + $0x6c] sm:$0xf] %vm1698_vm3, %v1949_v45  ;;  %v1512_v25 = vadd.f32 %v2723_v6, %v1469_v11  ;;  %v1470_v16 = vmax.f32 %v1398_v30, %v1434_v22 }
 0x163   :  { %1724 = vst.msk [vmem:[%s2978_s3 + $0x64] sm:$0xf] %vm1698_vm3, %v1947_v33  ;;  %v1510_v36 = vadd.f32 %v2723_v6, %v1467_v15  ;;  %v1468_v37 = vmax.f32 %v1396_v34, %v1432_v24 }
 0x164   :  { %v1548_v17 = vmax.f32 %v1512_v25, 0.0  ;;  %v1513_v46 = vadd.f32 %v2723_v6, %v1470_v16 }
 0x165   :  { %v1546_v47 = vmax.f32 %v1510_v36, 0.0  ;;  %v1511_v26 = vadd.f32 %v2723_v6, %v1468_v37  ;;  %v2106_v27 = vpop.f32.mrb[68].mxu0  ;;  %v2178_v48 = vpop.f32.mrb[68].mxu1 }
 0x166   :  { %v1952_v49 = vpack.c.bf16 %v1548_v17, %v1548_v17  ;;  %v1549_v2 = vmax.f32 %v1513_v46, 0.0  ;;  %v1401_v50 = vmax.f32 %v3021_v3, %v2106_v27  ;;  %v1437_v18 = vmax.f32 %v3022_v51, %v2178_v48  ;;  %v1064_v28 = vpop.f32.mrb[69].mxu0  ;;  %v1352_v29 = vpop.f32.mrb[69].mxu1 }
 0x167   :  { %v1950_v52 = vpack.c.bf16 %v1546_v47, %v1546_v47  ;;  %v1547_v53 = vmax.f32 %v1511_v26, 0.0  ;;  %v1399_v4 = vmax.f32 %v3023_v19, %v1064_v28  ;;  %v1435_v7 = vmax.f32 %v3024_v5, %v1352_v29  ;;  %v2107_v8 = vpop.f32.mrb[70].mxu0  ;;  %v2179_v20 = vpop.f32.mrb[70].mxu1 }
 0x168   :  { %1729 = vst.msk [vmem:[%s2978_s3 + $0x78] sm:$0xf] %vm1698_vm3, %v1952_v49  ;;  %v1953_v21 = vpack.c.bf16 %v1549_v2, %v1549_v2  ;;  %v1473_v9 = vmax.f32 %v1401_v50, %v1437_v18  ;;  %v1402_v38 = vmax.f32 %v3025_v1, %v2107_v8  ;;  %v1438_v10 = vmax.f32 %v3026_v39, %v2179_v20  ;;  %v1067_v13 = vpop.f32.mrb[71].mxu0  ;;  %v1355_v40 = vpop.f32.mrb[71].mxu1 }
 0x169   :  { %1727 = vst.msk [vmem:[%s2978_s3 + $0x70] sm:$0xf] %vm1698_vm3, %v1950_v52  ;;  %v1951_v41 = vpack.c.bf16 %v1547_v53, %v1547_v53  ;;  %v1471_v62 = vmax.f32 %v1399_v4, %v1435_v7  ;;  %v1400_v54 = vmax.f32 %v3027_v61, %v1067_v13  ;;  %v1436_v42 = vmax.f32 %v3028_v55, %v1355_v40 }
 0x16a   :  { %1730 = vst.msk [vmem:[%s2978_s3 + $0x7c] sm:$0xf] %vm1698_vm3, %v1953_v21  ;;  %v1516_v43 = vadd.f32 %v2723_v6, %v1473_v9  ;;  %v1474_v56 = vmax.f32 %v1402_v38, %v1438_v10 }
 0x16b   :  { %1728 = vst.msk [vmem:[%s2978_s3 + $0x74] sm:$0xf] %vm1698_vm3, %v1951_v41  ;;  %v1514_v57 = vadd.f32 %v2723_v6, %v1471_v62  ;;  %v1472_v63 = vmax.f32 %v1400_v54, %v1436_v42 }
 0x16c   :  { %v1552_v0 = vmax.f32 %v1516_v43, 0.0  ;;  %v1517_v14 = vadd.f32 %v2723_v6, %v1474_v56 }
 0x16d   :  { %v1550_v58 = vmax.f32 %v1514_v57, 0.0  ;;  %v1515_v59 = vadd.f32 %v2723_v6, %v1472_v63 }
 0x16e   :  { %v1956_v44 = vpack.c.bf16 %v1552_v0, %v1552_v0  ;;  %v1553_v45 = vmax.f32 %v1517_v14, 0.0 }
 0x16f   :  { %v1954_v11 = vpack.c.bf16 %v1550_v58, %v1550_v58  ;;  %v1551_v60 = vmax.f32 %v1515_v59, 0.0 }
 0x170   :  { %1733 = vst.msk [vmem:[%s2978_s3 + $0x88] sm:$0xf] %vm1698_vm3, %v1956_v44  ;;  %v1957_v30 = vpack.c.bf16 %v1553_v45, %v1553_v45 }
 0x171   :  { %1731 = vst.msk [vmem:[%s2978_s3 + $0x80] sm:$0xf] %vm1698_vm3, %v1954_v11  ;;  %v1955_v31 = vpack.c.bf16 %v1551_v60, %v1551_v60 }
 0x172   :  { %1734 = vst.msk [vmem:[%s2978_s3 + $0x8c] sm:$0xf] %vm1698_vm3, %v1957_v30 }
 0x173   :  { %1732 = vst.msk [vmem:[%s2978_s3 + $0x84] sm:$0xf] %vm1698_vm3, %v1955_v31 }

</bundles_post_ra>
